<compile_context>
chip_gen: v7x
topology: tpu7x:2x2x1
jax: 0.10.0
libtpu: 0.0.40
codegen_flags: <defaults>
</compile_context>

<pallas_src>
import jax
import jax.numpy as jnp
from jax.experimental import pallas as pl
from jax.experimental.pallas import tpu as pltpu


def _round_up(x, m):
    return -(-x // m) * m


def _make_kernel(num_classes, tile, tiles_per_half, total_rows, needs_mask):
    def kernel(logits_ref, true_ref, weight_ref, inter_ref, card_ref):
        # inter_ref / card_ref are resident (1,1,8,128) accumulators across the
        # innermost ("arbitrary") spatial-tile grid axis.
        @pl.when(pl.program_id(2) == 0)
        def _():
            inter_ref[...] = jnp.zeros_like(inter_ref)
            card_ref[...] = jnp.zeros_like(card_ref)

        # logits_ref: (1, C, tile, 128); true_ref / weight_ref: (1, tile, 128)
        # softmax prob of class 1 without a max pass:
        #   p1 = 1 / (1 + sum_{c != 1} exp(x_c - x_1)); overflow -> inf -> p1=0,
        # which is the correct limit in f32.
        x1 = logits_ref[0, 1].astype(jnp.float32)
        denom = jnp.ones_like(x1)                     # exp(x1 - x1) == 1
        for c in range(num_classes):                  # unrolled; full-width VPU/EUP
            if c == 1:
                continue
            denom = denom + jnp.exp(logits_ref[0, c].astype(jnp.float32) - x1)
        p1 = pl.reciprocal(denom, approx=True)        # EUP slot, VALU stays free

        w = weight_ref[0].astype(jnp.float32)         # (tile, 128)
        t1 = (true_ref[0] == 1).astype(jnp.float32)   # native label dtype compare

        pw = p1 * w                                   # shared products
        tw = t1 * w
        inter_c = pw * t1                             # p1 * t1 * w
        card_c = pw + tw                              # p1 * w + t1 * w

        if needs_mask:
            # Ragged tail (and phantom tiles of an uneven parallel split):
            # select in-range rows. jnp.where (select), NOT a 0/1 multiply, so
            # Inf/garbage in the out-of-bounds logits region can't NaN.
            g = pl.program_id(0) * tiles_per_half + pl.program_id(2)
            rows = g * tile + jax.lax.broadcasted_iota(jnp.int32, (tile, 128), 0)
            valid = rows < total_rows
            inter_c = jnp.where(valid, inter_c, 0.0)
            card_c = jnp.where(valid, card_c, 0.0)

        if tile % 8 == 0:
            # (tile,128) -> (8,128) with plain VPU adds (no per-step XLU scalar
            # reduction, no narrow masked stores), accumulate into the resident
            # lane-dense output block.
            k = tile // 8
            inter_r = jnp.sum(inter_c.reshape(k, 8, 128), axis=0)
            card_r = jnp.sum(card_c.reshape(k, 8, 128), axis=0)
            inter_ref[...] = inter_ref[...] + inter_r.reshape(1, 1, 8, 128)
            card_ref[...] = card_ref[...] + card_r.reshape(1, 1, 8, 128)
        else:
            # tile == S (single small full-dim tile): cross-sublane reduce to
            # (1,128) and accumulate into row 0 of the (8,128) block; the other
            # rows stay zero from the init above.
            inter_r = jnp.sum(inter_c, axis=0, keepdims=True)
            card_r = jnp.sum(card_c, axis=0, keepdims=True)
            inter_ref[0, 0, 0:1, :] = inter_ref[0, 0, 0:1, :] + inter_r
            card_ref[0, 0, 0:1, :] = card_ref[0, 0, 0:1, :] + card_r

    return kernel


def instance_aware_loss(logits, true, weight, eps=1e-5):
    """Pallas implementation of Instance_Aware_Loss.forward (NCHW inputs)."""
    N, C, H, W = logits.shape
    assert C >= 2, "Instance_Aware_Loss needs at least 2 classes (uses channel 1)"
    HW = H * W
    assert HW % 128 == 0, "flattened spatial dim must be a multiple of 128"
    S = HW // 128

    # ---- generation-aware VMEM budgeting -----------------------------------
    mib = 1024 * 1024
    try:
        vmem_phys = int(getattr(pltpu.get_tpu_info(), "vmem_capacity_bytes",
                                64 * mib))
    except Exception:
        vmem_phys = 64 * mib                   # conservative (v7x per-TC)
    # v7x (64 MiB physical) -> 48 MiB limit; v5e/v6e (128 MiB) -> 64 MiB limit.
    vmem_limit = int(max(32 * mib, min(vmem_phys - 16 * mib, 64 * mib)))
    tile_budget = (vmem_limit * 3) // 4        # headroom for outputs / runtime

    # Bytes per spatial row (128 lanes): double-buffered input blocks in their
    # native storage dtypes PLUS an allowance for the ~14 full-tile f32
    # temporaries the body materialises (x1, denom, exp temps, p1, w, t1, pw,
    # tw, inter_c, card_c, mask, reduction temps) which exceed the vreg file.
    lb = jnp.dtype(logits.dtype).itemsize
    tb = jnp.dtype(true.dtype).itemsize
    wb = jnp.dtype(weight.dtype).itemsize
    n_temps = 14
    bytes_per_row = 2 * 128 * (C * lb + tb + wb) + n_temps * 128 * 4

    # Sublane multiple so every block sits on native (8/16/32, 128) tiles.
    mult = max(8 * 4 // d for d in (lb, tb, wb))

    tile_max = max(mult, (tile_budget // bytes_per_row) // mult * mult)
    if S <= tile_max:
        tile, T = S, 1                         # single full-dim tile, no padding
    else:
        T = pl.cdiv(S, tile_max)
        tile = _round_up(pl.cdiv(S, T), mult)
        T = pl.cdiv(S, tile)

    # Leading spatial-parallel split: engages the 2nd v7x TensorCore even when
    # N == 1 (near-zero impact on the single-TC v5e/v6e).
    P = 2 if T >= 2 else 1
    TH = pl.cdiv(T, P)

    # Lane-dense views; reshapes of contiguous NCHW inputs are metadata-only
    # (no extra HBM pass) and no wrapper-side pad or dtype cast is performed.
    logits_r = logits.reshape(N, C, S, 128)
    true_r = true.reshape(N, S, 128)
    weight_r = weight.reshape(N, S, 128)

    needs_mask = (S % tile != 0) or (T % P != 0)
    kernel = _make_kernel(C, tile, TH, S, needs_mask)

    if T % P != 0:
        # Phantom tiles of the uneven split: clamp the DMA to the last valid
        # block (its contribution is zeroed by the in-kernel row mask).
        def s_idx(p, t):
            return jnp.minimum(p * TH + t, T - 1)
    else:
        def s_idx(p, t):
            return p * TH + t

    inter_out, card_out = pl.pallas_call(
        kernel,
        out_shape=(
            jax.ShapeDtypeStruct((P, N, 8, 128), jnp.float32),
            jax.ShapeDtypeStruct((P, N, 8, 128), jnp.float32),
        ),
        grid_spec=pltpu.PrefetchScalarGridSpec(
            num_scalar_prefetch=0,
            grid=(P, N, TH),
            in_specs=[
                pl.BlockSpec((1, C, tile, 128),
                             lambda p, b, t: (b, 0, s_idx(p, t), 0)),
                pl.BlockSpec((1, tile, 128),
                             lambda p, b, t: (b, s_idx(p, t), 0)),
                pl.BlockSpec((1, tile, 128),
                             lambda p, b, t: (b, s_idx(p, t), 0)),
            ],
            out_specs=[
                pl.BlockSpec((1, 1, 8, 128), lambda p, b, t: (p, b, 0, 0)),
                pl.BlockSpec((1, 1, 8, 128), lambda p, b, t: (p, b, 0, 0)),
            ],
        ),
        compiler_params=pltpu.CompilerParams(
            # split + batch axes parallel (megacore), spatial reduction arbitrary
            dimension_semantics=("parallel", "parallel", "arbitrary"),
            vmem_limit_bytes=vmem_limit,
        ),
    )(logits_r, true_r, weight_r)

    # Tiny epilogue in JAX: global sums over the per-(split, batch) partials,
    # then the dice ratio.
    inter_s = jnp.sum(inter_out)
    card_s = jnp.sum(card_out)
    dice = 2.0 * inter_s / (card_s + eps)
    # torch: intersection/cardinality have shape (1,); .mean() is a scalar no-op
    return 1.0 - dice


def _reference_loss(logits, true, weight, eps=1e-5):
    probas = jax.nn.softmax(logits, axis=1)[:, 1:2]          # (N,1,H,W)
    t1 = (true == 1).astype(jnp.float32)                     # (N,1,H,W)
    inter = jnp.sum(probas * t1 * weight)
    card = jnp.sum(probas * weight + t1 * weight)
    return 1.0 - 2.0 * inter / (card + eps)


if __name__ == "__main__":
    key = jax.random.PRNGKey(0)
    k1, k2, k3 = jax.random.split(key, 3)

    N, C, H, W = 2, 4, 16, 16
    logits = jax.random.normal(k1, (N, C, H, W), dtype=jnp.float32)
    true = jax.random.randint(k2, (N, 1, H, W), minval=0, maxval=C, dtype=jnp.int32)
    weight = jax.random.uniform(k3, (N, 1, H, W), dtype=jnp.float32)

    loss = instance_aware_loss(logits, true, weight)
    loss = jax.block_until_ready(loss)

    ref = _reference_loss(logits, true, weight)
    # tolerance relaxed slightly for the approx (EUP) reciprocal
    assert jnp.allclose(loss, ref, rtol=2e-3, atol=2e-3), (loss, ref)

    print("KERNEL_OK")
</pallas_src>

<mosaic_0001>
module attributes {stable_mosaic.version = 11 : i64} {
  func.func @kernel(%arg0: i32, %arg1: i32, %arg2: i32, %arg3: memref<1x4x2x128xf32, #tpu.memory_space<vmem>>, %arg4: memref<1x2x128xi32, #tpu.memory_space<vmem>>, %arg5: memref<1x2x128xf32, #tpu.memory_space<vmem>>, %arg6: memref<1x1x8x128xf32, #tpu.memory_space<vmem>>, %arg7: memref<1x1x8x128xf32, #tpu.memory_space<vmem>>) attributes {dimension_semantics = [#tpu.dimension_semantics<parallel>, #tpu.dimension_semantics<parallel>, #tpu.dimension_semantics<arbitrary>], iteration_bounds = array<i64: 1, 2, 1>, scalar_prefetch = 0 : i64, scratch_operands = 0 : i64, tpu.core_type = #tpu.core_type<tc>, window_params = [{transform_indices = @transform_0, window_bounds = array<i64: 1, 4, 2, 128>}, {transform_indices = @transform_1, window_bounds = array<i64: 1, 2, 128>}, {transform_indices = @transform_2, window_bounds = array<i64: 1, 2, 128>}, {transform_indices = @transform_3, window_bounds = array<i64: 1, 1, 8, 128>}, {transform_indices = @transform_4, window_bounds = array<i64: 1, 1, 8, 128>}]} {
    %c0_i32 = arith.constant 0 : i32
    %0 = arith.cmpi eq, %arg2, %c0_i32 : i32
    %1 = arith.extui %0 : i1 to i32
    %c0_i32_0 = arith.constant 0 : i32
    %2 = arith.cmpi ne, %1, %c0_i32_0 : i32
    scf.if %2 {
      %cst_37 = arith.constant 0.000000e+00 : f32
      %50 = vector.broadcast %cst_37 : f32 to vector<1x1x8x128xf32>
      %c0_38 = arith.constant 0 : index
      %c0_39 = arith.constant 0 : index
      %c0_40 = arith.constant 0 : index
      %c0_41 = arith.constant 0 : index
      %51 = vector.load %arg6[%c0_38, %c0_39, %c0_40, %c0_41] : memref<1x1x8x128xf32, #tpu.memory_space<vmem>>, vector<1x1x8x128xf32>
      tpu.vector_store %arg6[%c0_38, %c0_39, %c0_40, %c0_41], %50 {strides = array<i32>} : memref<1x1x8x128xf32, #tpu.memory_space<vmem>>, vector<1x1x8x128xf32>,
      %cst_42 = arith.constant 0.000000e+00 : f32
      %52 = vector.broadcast %cst_42 : f32 to vector<1x1x8x128xf32>
      %c0_43 = arith.constant 0 : index
      %c0_44 = arith.constant 0 : index
      %c0_45 = arith.constant 0 : index
      %c0_46 = arith.constant 0 : index
      %53 = vector.load %arg7[%c0_43, %c0_44, %c0_45, %c0_46] : memref<1x1x8x128xf32, #tpu.memory_space<vmem>>, vector<1x1x8x128xf32>
      tpu.vector_store %arg7[%c0_43, %c0_44, %c0_45, %c0_46], %52 {strides = array<i32>} : memref<1x1x8x128xf32, #tpu.memory_space<vmem>>, vector<1x1x8x128xf32>,
    } else {
    }
    %c0 = arith.constant 0 : index
    %c1 = arith.constant 1 : index
    %c0_1 = arith.constant 0 : index
    %c0_2 = arith.constant 0 : index
    %3 = vector.load %arg3[%c0, %c1, %c0_1, %c0_2] : memref<1x4x2x128xf32, #tpu.memory_space<vmem>>, vector<1x1x2x128xf32>
    %4 = vector.shape_cast %3 : vector<1x1x2x128xf32> to vector<2x128xf32>
    %cst = arith.constant 1.000000e+00 : f32
    %5 = vector.broadcast %cst : f32 to vector<2x128xf32>
    %c0_3 = arith.constant 0 : index
    %c0_4 = arith.constant 0 : index
    %c0_5 = arith.constant 0 : index
    %c0_6 = arith.constant 0 : index
    %6 = vector.load %arg3[%c0_3, %c0_4, %c0_5, %c0_6] : memref<1x4x2x128xf32, #tpu.memory_space<vmem>>, vector<1x1x2x128xf32>
    %7 = vector.shape_cast %6 : vector<1x1x2x128xf32> to vector<2x128xf32>
    %8 = arith.subf %7, %4 : vector<2x128xf32>
    %9 = math.exp %8 : vector<2x128xf32>
    %10 = arith.addf %5, %9 : vector<2x128xf32>
    %c0_7 = arith.constant 0 : index
    %c2 = arith.constant 2 : index
    %c0_8 = arith.constant 0 : index
    %c0_9 = arith.constant 0 : index
    %11 = vector.load %arg3[%c0_7, %c2, %c0_8, %c0_9] : memref<1x4x2x128xf32, #tpu.memory_space<vmem>>, vector<1x1x2x128xf32>
    %12 = vector.shape_cast %11 : vector<1x1x2x128xf32> to vector<2x128xf32>
    %13 = arith.subf %12, %4 : vector<2x128xf32>
    %14 = math.exp %13 : vector<2x128xf32>
    %15 = arith.addf %10, %14 : vector<2x128xf32>
    %c0_10 = arith.constant 0 : index
    %c3 = arith.constant 3 : index
    %c0_11 = arith.constant 0 : index
    %c0_12 = arith.constant 0 : index
    %16 = vector.load %arg3[%c0_10, %c3, %c0_11, %c0_12] : memref<1x4x2x128xf32, #tpu.memory_space<vmem>>, vector<1x1x2x128xf32>
    %17 = vector.shape_cast %16 : vector<1x1x2x128xf32> to vector<2x128xf32>
    %18 = arith.subf %17, %4 : vector<2x128xf32>
    %19 = math.exp %18 : vector<2x128xf32>
    %20 = arith.addf %15, %19 : vector<2x128xf32>
    %21 = tpu.reciprocal %20 {approx = true} : vector<2x128xf32> -> vector<2x128xf32>
    %c0_13 = arith.constant 0 : index
    %c0_14 = arith.constant 0 : index
    %c0_15 = arith.constant 0 : index
    %22 = vector.load %arg5[%c0_13, %c0_14, %c0_15] : memref<1x2x128xf32, #tpu.memory_space<vmem>>, vector<1x2x128xf32>
    %23 = vector.shape_cast %22 : vector<1x2x128xf32> to vector<2x128xf32>
    %c0_16 = arith.constant 0 : index
    %c0_17 = arith.constant 0 : index
    %c0_18 = arith.constant 0 : index
    %24 = vector.load %arg4[%c0_16, %c0_17, %c0_18] : memref<1x2x128xi32, #tpu.memory_space<vmem>>, vector<1x2x128xi32>
    %25 = vector.shape_cast %24 : vector<1x2x128xi32> to vector<2x128xi32>
    %c1_i32 = arith.constant 1 : i32
    %26 = vector.broadcast %c1_i32 : i32 to vector<2x128xi32>
    %27 = arith.cmpi eq, %25, %26 : vector<2x128xi32>
    %28 = arith.extui %27 : vector<2x128xi1> to vector<2x128xi32>
    %29 = arith.sitofp %28 : vector<2x128xi32> to vector<2x128xf32>
    %30 = arith.mulf %21, %23 : vector<2x128xf32>
    %31 = arith.mulf %29, %23 : vector<2x128xf32>
    %32 = arith.mulf %30, %29 : vector<2x128xf32>
    %33 = arith.addf %30, %31 : vector<2x128xf32>
    %cst_19 = arith.constant dense<0.000000e+00> : vector<128xf32>
    %34 = vector.multi_reduction <add>, %32, %cst_19 [0] : vector<2x128xf32> to vector<128xf32>
    %35 = vector.shape_cast %34 : vector<128xf32> to vector<1x128xf32>
    %cst_20 = arith.constant dense<0.000000e+00> : vector<128xf32>
    %36 = vector.multi_reduction <add>, %33, %cst_20 [0] : vector<2x128xf32> to vector<128xf32>
    %37 = vector.shape_cast %36 : vector<128xf32> to vector<1x128xf32>
    %c0_21 = arith.constant 0 : index
    %c0_22 = arith.constant 0 : index
    %c0_23 = arith.constant 0 : index
    %c0_24 = arith.constant 0 : index
    %38 = vector.load %arg6[%c0_21, %c0_22, %c0_23, %c0_24] : memref<1x1x8x128xf32, #tpu.memory_space<vmem>>, vector<1x1x1x128xf32>
    %39 = vector.shape_cast %38 : vector<1x1x1x128xf32> to vector<1x128xf32>
    %40 = arith.addf %39, %35 : vector<1x128xf32>
    %c0_25 = arith.constant 0 : index
    %c0_26 = arith.constant 0 : index
    %c0_27 = arith.constant 0 : index
    %c0_28 = arith.constant 0 : index
    %41 = vector.load %arg6[%c0_25, %c0_26, %c0_27, %c0_28] : memref<1x1x8x128xf32, #tpu.memory_space<vmem>>, vector<1x1x1x128xf32>
    %42 = vector.shape_cast %41 : vector<1x1x1x128xf32> to vector<1x128xf32>
    %43 = vector.shape_cast %40 : vector<1x128xf32> to vector<1x1x1x128xf32>
    tpu.vector_store %arg6[%c0_25, %c0_26, %c0_27, %c0_28], %43 {strides = array<i32>} : memref<1x1x8x128xf32, #tpu.memory_space<vmem>>, vector<1x1x1x128xf32>,
    %c0_29 = arith.constant 0 : index
    %c0_30 = arith.constant 0 : index
    %c0_31 = arith.constant 0 : index
    %c0_32 = arith.constant 0 : index
    %44 = vector.load %arg7[%c0_29, %c0_30, %c0_31, %c0_32] : memref<1x1x8x128xf32, #tpu.memory_space<vmem>>, vector<1x1x1x128xf32>
    %45 = vector.shape_cast %44 : vector<1x1x1x128xf32> to vector<1x128xf32>
    %46 = arith.addf %45, %37 : vector<1x128xf32>
    %c0_33 = arith.constant 0 : index
    %c0_34 = arith.constant 0 : index
    %c0_35 = arith.constant 0 : index
    %c0_36 = arith.constant 0 : index
    %47 = vector.load %arg7[%c0_33, %c0_34, %c0_35, %c0_36] : memref<1x1x8x128xf32, #tpu.memory_space<vmem>>, vector<1x1x1x128xf32>
    %48 = vector.shape_cast %47 : vector<1x1x1x128xf32> to vector<1x128xf32>
    %49 = vector.shape_cast %46 : vector<1x128xf32> to vector<1x1x1x128xf32>
    tpu.vector_store %arg7[%c0_33, %c0_34, %c0_35, %c0_36], %49 {strides = array<i32>} : memref<1x1x8x128xf32, #tpu.memory_space<vmem>>, vector<1x1x1x128xf32>,
    return
  }
  func.func @transform_0(%arg0: i32, %arg1: i32, %arg2: i32) -> (i32, i32, i32, i32) {
    %c1_i32 = arith.constant 1 : i32
    %0 = arith.muli %arg0, %c1_i32 : i32
    %1 = arith.addi %0, %arg2 : i32
    %c0_i32 = arith.constant 0 : i32
    %c0_i32_0 = arith.constant 0 : i32
    %c0_i32_1 = arith.constant 0 : i32
    return %arg1, %c0_i32, %1, %c0_i32_0 : i32, i32, i32, i32
  }
  func.func @transform_1(%arg0: i32, %arg1: i32, %arg2: i32) -> (i32, i32, i32) {
    %c1_i32 = arith.constant 1 : i32
    %0 = arith.muli %arg0, %c1_i32 : i32
    %1 = arith.addi %0, %arg2 : i32
    %c0_i32 = arith.constant 0 : i32
    %c0_i32_0 = arith.constant 0 : i32
    return %arg1, %1, %c0_i32 : i32, i32, i32
  }
  func.func @transform_2(%arg0: i32, %arg1: i32, %arg2: i32) -> (i32, i32, i32) {
    %c1_i32 = arith.constant 1 : i32
    %0 = arith.muli %arg0, %c1_i32 : i32
    %1 = arith.addi %0, %arg2 : i32
    %c0_i32 = arith.constant 0 : i32
    %c0_i32_0 = arith.constant 0 : i32
    return %arg1, %1, %c0_i32 : i32, i32, i32
  }
  func.func @transform_3(%arg0: i32, %arg1: i32, %arg2: i32) -> (i32, i32, i32, i32) {
    %c0_i32 = arith.constant 0 : i32
    %c0_i32_0 = arith.constant 0 : i32
    %c0_i32_1 = arith.constant 0 : i32
    return %arg0, %arg1, %c0_i32, %c0_i32_0 : i32, i32, i32, i32
  }
  func.func @transform_4(%arg0: i32, %arg1: i32, %arg2: i32) -> (i32, i32, i32, i32) {
    %c0_i32 = arith.constant 0 : i32
    %c0_i32_0 = arith.constant 0 : i32
    %c0_i32_1 = arith.constant 0 : i32
    return %arg0, %arg1, %c0_i32, %c0_i32_0 : i32, i32, i32, i32
  }
}

</mosaic_0001>

<bundles_post_ra>
// kernel: tpu_custom_call.1
= control target key start
LH: loop header
LB: loop body
LE: loop exit
PB: predicated region body
PF: predicated region fallthrough
CT: control target
= control target key end

     0   :  { %10 = vsyncpa [#allocation3], 0  ;;  %s1173_s0 = inlined_call_operand.hbm [shape: f32[2,4,2,128], index: 0, kind: input, shape index: {}]   ;;  %s1174_s1 = inlined_call_operand.hbm [shape: s32[2,2,128], index: 1, kind: input, shape index: {}]   ;;  %s1175_s2 = inlined_call_operand.vmem [shape: f32[2,2,128], index: 2, kind: input, shape index: {}]   ;;  %s1176_s3 = inlined_call_operand.hbm [shape: f32[1,2,8,128], index: 3, kind: output, shape index: {0}]   ;;  %s1177_s4 = inlined_call_operand.hbm [shape: f32[1,2,8,128], index: 4, kind: output, shape index: {1}]  }
   0x1   :  { %12 = vsyncpa [#allocation3 + $0x1], 0 }
   0x2   :  { %13 = vsyncpa [#allocation6], 0 }
   0x3   :  { %15 = vsyncpa [#allocation6 + $0x1], 0 }
   0x4   :  { %16 = vsyncpa [#allocation4], 0 }
   0x5   :  { %18 = vsyncpa [#allocation4 + $0x1], 0 }
   0x6   :  { %19 = vsyncpa [#allocation9], 0 }
   0x7   :  { %21 = vsyncpa [#allocation9 + $0x1], 0  ;;  %s909_s15 = smov 0   ;;  %s911_s16 = smov 0  }
   0x8   :  { %s913_s17 = smov 0   ;;  %s915_s18 = smov 0  }
   0x9   :  { %s917_s19 = smov 0   ;;  %s919_s20 = smov 0  }
   0xa LB: > { %s588_s21 = sadd.s32 4294967295, %s875_s20   ;;  %s589_s22 = sadd.s32 4294967294, %s875_s20   ;;  %s875_s20 = sphi %s919_s20, %s27_s20   ;;  %s871_s19 = sphi %s917_s19, %s1196_s19   ;;  %s867_s18 = sphi %s915_s18, %s1195_s18   ;;  %s863_s17 = sphi %s913_s17, %s1194_s17   ;;  %s859_s16 = sphi %s911_s16, %s1193_s16   ;;  %s855_s15 = sphi %s909_s15, %s1192_s15  }
   0xb   : > { %s42_s23 = sadd.s32 1, %s871_s19  ;;  %s57_s24 = sadd.s32 1, %s863_s17 }
   0xc   : > { %p44_p0 = scmp.ge.s32.totalorder %s42_s23, 2  ;;  %p64_p1 = scmp.ne.s32.totalorder %s863_s17, %s859_s16 }
   0xd   : > { %p65_p2 = scmp.eq.s32.totalorder %s875_s20, 0  ;;  %p70_p3 = scmp.ne.s32.totalorder %s859_s16, %s855_s15 }
   0xe   : > { %s1198_s23 = smov (%p44_p0, %s42_s23), 0  ;;  %p71_p5 = scmp.eq.s32.totalorder %s588_s21, 0 }
   0xf   : > { %p950_p4 = por %p65_p2, %p64_p1  ;;  %s52_s26 = ssub.s32 %s871_s19, %s1198_s23 }
  0x10   : > { %p156_p6 = scmp.eq.s32.totalorder %s588_s21, 1  ;;  %p55_p7 = scmp.eq.s32.totalorder %s52_s26, 0 }
  0x11   : > { %p956_p8 = por %p71_p5, %p70_p3  ;;  %p162_p10 = scmp.eq.s32.totalorder %s589_s22, 1 }
  0x12   : > { %p960_p9 = por %p156_p6, %p64_p1  ;;  %p636_p13 = scmp.lt.s32.totalorder %s875_s20, 2 }
  0x13   : > { %s1181_s27 = scalar_select %p956_p8, 1, 0 }
  0x14   : > { %s1182_s28 = scalar_select %p960_p9, 1, 0 }
  0x15   : > { %s965_s29 = scalar_select %p55_p7, %s863_s17, %s57_s24  }
  0x16   : > { %p967_p11 = por %p162_p10, %p70_p3  ;;  %s974_s5 = sand.u32 1, %s863_s17  }
  0x17   : > { %s592_s6 = sshll.u32 %s974_s5, 3  ;;  %s613_s7 = sshll.u32 %s871_s19, 7 }
  0x18   : > { %s1183_s30 = scalar_select %p967_p11, 1, 0 }
  0x19   : > { %s981_s10 = scalar_lea.hbm %s1173_s0, %s613_s7  ;;  %s214_s11 = scalar_lea.vmem [#allocation2], %s592_s6 }
  0x1a   : > { %s223_s12 = sshll.u32 %s214_s11, 4  ;;  %p987_p0 = pnand %p636_p13, %p950_p4  ;;  %s983_s12 = int_to_ptr.vmem [resolvable:$true] %s223_s12 }
  0x1b   : > { %s211_s14 = scalar_lea.sflag [#allocation3], %s974_s5  ;;  %s697_s21 = scalar_lea.hbm %s981_s10, 128 }
  0x1c   : > { %p698_p2 = scmp.ne.s32.totalorder %s981_s10, %s697_s21  ;;  %p699_p3 = pneg %p987_p0 }
  0x1d   : > { %s702_s25 = scalar_lea.hbm %s1173_s0, 256  ;;  %p703_p4 = scmp.lt.u32.totalorder %s981_s10, %s1173_s0 }
  0x1e   : > { %p700_p5 = pnand %p699_p3, %p698_p2  ;;  %p704_p7 = scmp.lt.u32.totalorder %s702_s25, %s697_s21 }
  0x1f   : > { %p706_p13 = scmp.lt.u32.totalorder %s697_s21, %s981_s10 }
  0x20   : > { %p701_p6 = pneg %p700_p5  ;;  %p705_p10 = por %p704_p7, %p703_p4 }
  0x22   : > { %p707_p12 = por %p706_p13, %p705_p10 }
  0x24   : > { %p708_p1 = pnand %p707_p12, %p701_p6 }
  0x26   : > { %711 = shalt.err (!%p708_p1)
}
  0x27   : > { %s712_s7 = scalar_lea.vmem %s983_s12, 128  ;;  %s877_s8 = smov [#allocation2]  }
  0x28   : > { %p713_p2 = scmp.ne.s32.totalorder %s983_s12, %s712_s7  ;;  %s717_s9 = sshll.u32 %s877_s8, 4  ;;  %s718_s9 = int_to_ptr.vmem [resolvable:$false] %s717_s9 }
  0x29   : > { %s719_s11 = scalar_lea.vmem %s718_s9, 256  ;;  %p720_p9 = scmp.lt.s32.totalorder %s983_s12, %s718_s9 }
  0x2a   : > { %p715_p5 = pnand %p713_p2, %p699_p3  ;;  %p721_p4 = scmp.lt.s32.totalorder %s719_s11, %s712_s7 }
  0x2c   : > { %p716_p11 = pneg %p715_p5  ;;  %p722_p7 = por %p721_p4, %p720_p9 }
  0x2e   : > { %p723_p10 = pnand %p722_p7, %p716_p11 }
  0x30   : > { %726 = shalt.err (!%p723_p10)
}
  0x31   : > { %s878_s21 = smov 32   ;;  %s879_s22 = smov 2  }
  0x32   : > { %625 = dma.hbm_to_vmem [thread:$0]  (!%p987_p0), %s981_s10, 128, %s983_s12, %s211_s14, %s878_s21, %s878_s21, %s879_s22  }
  0x33   : > { %p263_p12 = scmp.lt.s32.totalorder %s875_s20, 3  ;;  %s595_s24 = sshll.u32 %s974_s5, 1 }
  0x34   : > { %s596_s25 = sshll.u32 %s871_s19, 5  ;;  %p1185_p9 = scmp.ge.s32.totalorder %s875_s20, 1 }
  0x35   : > { %s1032_s8 = scalar_lea.hbm %s1174_s1, %s596_s25  ;;  %s237_s9 = scalar_lea.vmem [#allocation5], %s595_s24 }
  0x36   : > { %p1025_p11 = pnand %p1185_p9, %p263_p12  ;;  %s246_s11 = sshll.u32 %s237_s9, 4  ;;  %s247_s11 = int_to_ptr.vmem [resolvable:$true] %s246_s11 }
  0x37   : > { %s234_s10 = scalar_lea.sflag [#allocation6], %s974_s5  ;;  %s727_s12 = scalar_lea.hbm %s1032_s8, 32 }
  0x38   : > { %s1186_s26 = scalar_select %p1025_p11, 1, 0 }
  0x39   : > { %p728_p1 = scmp.ne.s32.totalorder %s1032_s8, %s727_s12  ;;  %s732_s22 = scalar_lea.hbm %s1174_s1, 64 }
  0x3a   : > { %p733_p2 = scmp.lt.u32.totalorder %s1032_s8, %s1174_s1  ;;  %p734_p5 = scmp.lt.u32.totalorder %s732_s22, %s727_s12 }
  0x3b   : > { %p730_p6 = pnand %p728_p1, %p699_p3  ;;  %p736_p7 = scmp.lt.u32.totalorder %s727_s12, %s1032_s8 }
  0x3c   : > { %p735_p4 = por %p734_p5, %p733_p2 }
  0x3d   : > { %p731_p13 = pneg %p730_p6 }
  0x3e   : > { %p737_p10 = por %p736_p7, %p735_p4 }
  0x40   : > { %p738_p12 = pnand %p737_p10, %p731_p13 }
  0x42   : > { %741 = shalt.err (!%p738_p12)
}
  0x43   : > { %s742_s5 = scalar_lea.vmem %s247_s11, 32  ;;  %s880_s24 = smov [#allocation5]  }
  0x44   : > { %p743_p9 = scmp.ne.s32.totalorder %s247_s11, %s742_s5  ;;  %s747_s7 = sshll.u32 %s880_s24, 4  ;;  %s748_s7 = int_to_ptr.vmem [resolvable:$false] %s747_s7 }
  0x45   : > { %s749_s9 = scalar_lea.vmem %s748_s7, 64  ;;  %p750_p8 = scmp.lt.s32.totalorder %s247_s11, %s748_s7 }
  0x46   : > { %p745_p1 = pnand %p743_p9, %p699_p3  ;;  %p751_p11 = scmp.lt.s32.totalorder %s749_s9, %s742_s5 }
  0x48   : > { %p746_p6 = pneg %p745_p1  ;;  %p752_p2 = por %p751_p11, %p750_p8 }
  0x4a   : > { %p753_p5 = pnand %p752_p2, %p746_p6 }
  0x4c   : > { %756 = shalt.err (!%p753_p5)
}
  0x4d   : > { %628 = dma.hbm_to_vmem [thread:$0]  (!%p987_p0), %s1032_s8, 32, %s247_s11, %s234_s10  }
  0x4e   : > { %p1187_p13 = scmp.ne.s32.totalorder %s1186_s26, 0 }
  0x4f   : > { %s1057_s12 = sand.u32 (!%p1187_p13), 1, %s859_s16   ;;  %p1188_p3 = scmp.ne.s32.totalorder (!%p1187_p13), %s1181_s27, 0 }
  0x50   : > { %267 = sbr.rel (%p1187_p13) target bundleno = 181 (0xb5), region = 32  ;;  %s598_s14 = sshll.u32 (!%p1187_p13), %s1057_s12, 3 }
  0x51   : > { %s270_s21 = scalar_lea.sflag (!%p1187_p13), [#allocation3], %s1057_s12  ;;  %s273_s22 = scalar_lea.vmem (!%p1187_p13), [#allocation2], %s598_s14 }
  0x57   : > { %838 = dma.done.wait (%p1188_p3), %s270_s21, 128  }
  0x58   : > { %840 = vsyncadd (%p1188_p3), %s270_s21, 4294967168  ;;  %s599_s13 = sshll.u32 %s1057_s12, 1  ;;  %s279_s26 = scalar_lea.sflag [#allocation6], %s1057_s12 }
  0x59   : > { %s1067_s8 = scalar_lea.vmem [#allocation5], %s599_s13 }
  0x5a   : > { %842 = dma.done.wait (%p1188_p3), %s279_s26, 32  }
  0x5b   : > { %844 = vsyncadd (%p1188_p3), %s279_s26, 4294967264  ;;  %s1073_s11 = scalar_lea.vmem [#allocation7], %s598_s14  ;;  %v881_v0 = vmov 0.0   ;;  %s1076_s10 = scalar_lea.vmem [#allocation8], %s598_s14  ;;  %v603_v1 = vld [vmem:[%s273_s22 + $0x2] sm:$0x3] }
  0x5c   : > { %340 = vst [vmem:[%s1073_s11] sm:$0xff] %v881_v0  ;;  %341 = vst [vmem:[%s1076_s10] sm:$0xff] %v881_v0  ;;  %v344_v2 = vld [vmem:[%s273_s22] sm:$0x3]  ;;  %v604_v3 = vld [vmem:[%s273_s22 + $0x4] sm:$0x3]  ;;  %p328_p8 = scmp.lt.s32.totalorder %s867_s18, 1  ;;  %vm371_vm1 = vcmask 1041408  }
  0x5d   : > { %v345_v4 = vsub.f32 %v344_v2, %v603_v1  ;;  %v351_v5 = vsub.f32 %v604_v3, %v603_v1  ;;  %v605_v6 = vld [vmem:[%s273_s22 + $0x6] sm:$0x3]  ;;  %v363_v17 = vld [vmem:[%s1067_s8] sm:$0x3]  ;;  %s413_s7 = sshll.u32 %s1073_s11, 4  ;;  %s428_s9 = sshll.u32 %s1076_s10, 4  ;;  %s1090_s7 = int_to_ptr.vmem [resolvable:$true] %s413_s7  ;;  %s1092_s9 = int_to_ptr.vmem [resolvable:$true] %s428_s9 }
  0x5e   : > { %v357_v7 = vsub.f32 %v605_v6, %v603_v1  ;;  %s329_s27 = scalar_select %p328_p8, %s867_s18, 1  ;;  %vm364_vm0 = vcmp.eq.s32.totalorder %v363_v17, 1 }
  0x5f   : > { %v346_v8 = vmul.f32 1.442695, %v345_v4  ;;  %v352_v9 = vmul.f32 1.442695, %v351_v5  ;;  %v606_v19 = vsel %vm364_vm0, 1.0, %v881_v0  ;;  %s609_s14 = sshll.u32 %s867_s18, 7 }
  0x60   : > { %v358_v10 = vmul.f32 1.442695, %v357_v7  ;;  %s602_s25 = sshll.u32 %s329_s27, 1  ;;  %s1097_s13 = scalar_lea.hbm %s1176_s3, %s609_s14 }
  0x61   : > { %689 = vpow2.f32 %v346_v8  ;;  %s334_s24 = scalar_lea.vmem %s1175_s2, %s602_s25  ;;  %s1102_s18 = scalar_lea.hbm %s1177_s4, %s609_s14 }
  0x62   : > { %691 = vpow2.f32 %v352_v9  ;;  %v362_v18 = vld [vmem:[%s334_s24] sm:$0x3]  ;;  %s393_s27 = scalar_lea.sflag [#allocation4], %s1057_s12  ;;  %s757_s25 = scalar_lea.vmem %s1090_s7, 128 }
  0x63   : > { %693 = vpow2.f32 %v358_v10  ;;  %v368_v20 = vmul.f32 %v606_v19, %v362_v18  ;;  %v386_v37 = vld [vmem:[%s1073_s11] sm:$0x1]  ;;  %v389_v38 = vld [vmem:[%s1076_s10] sm:$0x1]  ;;  %p758_p0 = scmp.ne.s32.totalorder %s1090_s7, %s757_s25  ;;  %p1189_p11 = scmp.ne.s32.totalorder %s1182_s28, 0 }
  0x64   : > { %s882_s6 = smov [#allocation7]  }
  0x65   : > { %p759_p4 = pnand %p758_p0, %p1189_p11  ;;  %s761_s5 = sshll.u32 %s882_s6, 4  ;;  %s762_s5 = int_to_ptr.vmem [resolvable:$false] %s761_s5 }
  0x66   : > { %s763_s24 = scalar_lea.vmem %s762_s5, 256  ;;  %p764_p10 = scmp.lt.s32.totalorder %s1090_s7, %s762_s5 }
  0x67   : > { %p760_p7 = pneg %p759_p4  ;;  %p765_p12 = scmp.lt.s32.totalorder %s763_s24, %s757_s25 }
  0x69   : > { %p766_p9 = por %p765_p12, %p764_p10 }
  0x6b   : > { %v690_v11 = vpop.eup %689  ;;  %p767_p1 = pnand %p766_p9, %p760_p7 }
  0x6c   : > { %v692_v12 = vpop.eup %691  ;;  %v348_v13 = vadd.f32 1.0, %v690_v11 }
  0x6d   : > { %v694_v14 = vpop.eup %693 }
  0x6e   : > { %v354_v15 = vadd.f32 %v692_v12, %v348_v13 }
  0x70   : > { %v360_v16 = vadd.f32 %v694_v14, %v354_v15 }
  0x72   : > { %695 = vrcp.f32 %v360_v16 }
  0x7c   : > { %v696_v21 = vpop.eup %695 }
  0x7d   : > { %v367_v22 = vmul.f32 %v696_v21, %v362_v18 }
  0x7f   : > { %v369_v23 = vmul.f32 %v606_v19, %v367_v22  ;;  %v370_v24 = vadd.f32 %v368_v20, %v367_v22 }
  0x81   : > { %v372_v25 = vsel %vm371_vm1, %v369_v23, 0.0  ;;  %v379_v26 = vsel %vm371_vm1, %v370_v24, 0.0 }
  0x82   : > { %v373_v27 = vrot.slane %v372_v25, 4  ;;  %v380_v28 = vrot.slane %v379_v26, 4 }
  0x84   : > { %v374_v29 = vadd.f32 %v373_v27, %v372_v25  ;;  %v381_v30 = vadd.f32 %v380_v28, %v379_v26 }
  0x86   : > { %v375_v31 = vrot.slane %v374_v29, 2  ;;  %v382_v32 = vrot.slane %v381_v30, 2 }
  0x88   : > { %v376_v33 = vadd.f32 %v375_v31, %v374_v29  ;;  %v383_v34 = vadd.f32 %v382_v32, %v381_v30 }
  0x8a   : > { %v377_v35 = vrot.slane %v376_v33, 1  ;;  %v384_v36 = vrot.slane %v383_v34, 1 }
  0x8c   : > { %v378_v39 = vadd.f32 %v377_v35, %v376_v33  ;;  %v385_v40 = vadd.f32 %v384_v36, %v383_v34 }
  0x8e   : > { %v387_v41 = vadd.f32 %v386_v37, %v378_v39  ;;  %v390_v42 = vadd.f32 %v389_v38, %v385_v40 }
  0x90   : > { %388 = vst [vmem:[%s1073_s11] sm:$0x1] %v387_v41  ;;  %391 = vst [vmem:[%s1076_s10] sm:$0x1] %v390_v42 }
  0x91   : > { %770 = shalt.err (!%p767_p1)
}
  0x92   : > { %s771_s11 = scalar_lea.hbm %s1097_s13, 128  ;;  %s775_s21 = scalar_lea.hbm %s1176_s3, 256 }
  0x93   : > { %p772_p6 = scmp.ne.s32.totalorder %s1097_s13, %s771_s11  ;;  %p776_p13 = scmp.lt.u32.totalorder %s1097_s13, %s1176_s3 }
  0x94   : > { %p777_p3 = scmp.lt.u32.totalorder %s775_s21, %s771_s11  ;;  %p779_p0 = scmp.lt.u32.totalorder %s771_s11, %s1097_s13 }
  0x95   : > { %p773_p2 = pnand %p772_p6, %p1189_p11 }
  0x96   : > { %p778_p8 = por %p777_p3, %p776_p13 }
  0x97   : > { %p774_p5 = pneg %p773_p2 }
  0x98   : > { %p780_p4 = por %p779_p0, %p778_p8 }
  0x9a   : > { %p781_p7 = pnand %p780_p4, %p774_p5 }
  0x9c   : > { %784 = shalt.err (!%p781_p7)
}
  0x9d   : > { %618 = dma.vmem_to_hbm [thread:$0]  (%p1189_p11), %s1090_s7, 128, %s1097_s13, %s393_s27  }
  0x9e   : > { %s398_s8 = scalar_lea.sflag [#allocation9], %s1057_s12  ;;  %s785_s25 = scalar_lea.vmem %s1092_s9, 128 }
  0x9f   : > { %p786_p10 = scmp.ne.s32.totalorder %s1092_s9, %s785_s25  ;;  %s883_s6 = smov [#allocation8]  }
  0xa0   : > { %s789_s5 = sshll.u32 %s883_s6, 4  ;;  %s790_s5 = int_to_ptr.vmem [resolvable:$false] %s789_s5 }
  0xa1   : > { %p787_p12 = pnand %p786_p10, %p1189_p11  ;;  %s791_s24 = scalar_lea.vmem %s790_s5, 256 }
  0xa2   : > { %p792_p1 = scmp.lt.s32.totalorder %s1092_s9, %s790_s5  ;;  %p793_p6 = scmp.lt.s32.totalorder %s791_s24, %s785_s25 }
  0xa3   : > { %p788_p9 = pneg %p787_p12 }
  0xa4   : > { %p794_p2 = por %p793_p6, %p792_p1 }
  0xa6   : > { %p795_p5 = pnand %p794_p2, %p788_p9 }
  0xa8   : > { %798 = shalt.err (!%p795_p5)
}
  0xa9   : > { %s799_s12 = scalar_lea.hbm %s1102_s18, 128  ;;  %s803_s27 = scalar_lea.hbm %s1177_s4, 256 }
  0xaa   : > { %p800_p13 = scmp.ne.s32.totalorder %s1102_s18, %s799_s12  ;;  %p804_p0 = scmp.lt.u32.totalorder %s1102_s18, %s1177_s4 }
  0xab   : > { %p805_p4 = scmp.lt.u32.totalorder %s803_s27, %s799_s12  ;;  %p807_p10 = scmp.lt.u32.totalorder %s799_s12, %s1102_s18 }
  0xac   : > { %p801_p3 = pnand %p800_p13, %p1189_p11 }
  0xad   : > { %p806_p7 = por %p805_p4, %p804_p0 }
  0xae   : > { %p802_p8 = pneg %p801_p3 }
  0xaf   : > { %p808_p12 = por %p807_p10, %p806_p7 }
  0xb1   : > { %p809_p9 = pnand %p808_p12, %p802_p8 }
  0xb3   : > { %812 = shalt.err (!%p809_p9)
}
  0xb4   : > { %619 = dma.vmem_to_hbm [thread:$0]  (%p1189_p11), %s1092_s9, 128, %s1102_s18, %s398_s8  }
  0xb5 PF: > { %s440_s14 = sand.u32 1, %s855_s15   ;;  %p1190_p1 = scmp.ne.s32.totalorder %s1183_s30, 0 }
  0xb6   : > { %p1191_p6 = scmp.ge.s32.totalorder %s875_s20, 2  ;;  %s441_s21 = scalar_lea.sflag [#allocation4], %s440_s14 }
  0xb8   : > { %p630_p2 = pnand %p1191_p6, %p1190_p1 }
  0xba   : > { %846 = dma.done.wait (!%p630_p2), %s441_s21, 128  }
  0xbb   : > { %848 = vsyncadd (!%p630_p2), %s441_s21, 4294967168  ;;  %s450_s22 = scalar_lea.sflag [#allocation9], %s440_s14 }
  0xbc   : > { %850 = dma.done.wait (!%p630_p2), %s450_s22, 128  }
  0xbd   : > { %852 = vsyncadd (!%p630_p2), %s450_s22, 4294967168  ;;  %s27_s20 = sadd.s32 1, %s875_s20   ;;  %s1192_s15 = smov %s859_s16 }
  0xbe   : > { %p24_p5 = scmp.ge.s32.totalorder %s27_s20, 4   ;;  %s1193_s16 = smov %s863_s17 }
  0xbf   : > { %s1194_s17 = smov %s965_s29  ;;  %s1195_s18 = smov %s871_s19 }
  0xc0   : > { %s1196_s19 = smov %s1198_s23  ;;  %26 = sbr.rel (!%p24_p5) target bundleno = 10 (0xa), region = 117 }
  0xc7   :  { %455 = vsyncpa [#allocation3], 1 }
  0xc8   :  { %457 = vsyncpa [#allocation3 + $0x1], 1 }
  0xc9   :  { %458 = vsyncpa [#allocation6], 1 }
  0xca   :  { %460 = vsyncpa [#allocation6 + $0x1], 1 }
  0xcb   :  { %461 = vsyncpa [#allocation4], 1 }
  0xcc   :  { %463 = vsyncpa [#allocation4 + $0x1], 1 }
  0xcd   :  { %464 = vsyncpa [#allocation9], 1 }
  0xce   :  { %466 = vsyncpa [#allocation9 + $0x1], 1 }

</bundles_post_ra>
